<compile_context>
chip_gen: v6e
topology: v6e:2x2x1
jax: 0.10.0
libtpu: 0.0.40
codegen_flags: <defaults>
</compile_context>

<pallas_src>
import jax
import jax.numpy as jnp
from jax.experimental import pallas as pl
from jax.experimental.pallas import tpu as pltpu


DENSE_DIM = 128
HEAD_PAD = 128                 # lane-dense padded head width
POSITION_ACTIONS = 51
ROTATION_ACTIONS = 24

# act value -> head index (0: panel, 1: position, 2: rotation)
_HEAD_INDEX = {0: 0, 1: 1, 2: 1, 3: 2}


def _round_up(n, m):
    return ((n + m - 1) // m) * m


def _actor_kernel(act_ref,                       # SMEM scalar prefetch (used by index_maps)
                  x_ref,                         # (TB, state_dim)  f32 input tile
                  w1_ref, w2_ref, w3_ref, w4_ref,  # bf16 weights, (in, out) layout
                  bh_ref,                        # (4, 128) f32 hidden biases
                  wo_ref,                        # (1, 128, 128) bf16 selected padded head W
                  bo_ref,                        # (1, 1, 128)   f32 selected padded head b
                  out_ref):                      # (TB, 128) bf16 softmax probs (pad cols == 0)
    del act_ref  # consumed only by the index_maps

    # cast the f32 input tile to bf16 in-kernel (hidden under MXU/DMA slack)
    xb = x_ref[...].astype(jnp.bfloat16)

    # input layer + ReLU (f32 accumulation on the MXU, bf16 activations between layers)
    h = jnp.dot(xb, w1_ref[...], preferred_element_type=jnp.float32)
    h = jnp.maximum(h + bh_ref[0:1, :], 0.0).astype(jnp.bfloat16)
    # hidden_1 + ReLU
    h = jnp.dot(h, w2_ref[...], preferred_element_type=jnp.float32)
    h = jnp.maximum(h + bh_ref[1:2, :], 0.0).astype(jnp.bfloat16)
    # hidden_2 + ReLU
    h = jnp.dot(h, w3_ref[...], preferred_element_type=jnp.float32)
    h = jnp.maximum(h + bh_ref[2:3, :], 0.0).astype(jnp.bfloat16)
    # hidden_3 + ReLU
    h = jnp.dot(h, w4_ref[...], preferred_element_type=jnp.float32)
    h = jnp.maximum(h + bh_ref[3:4, :], 0.0).astype(jnp.bfloat16)

    # selected head (padded to 128 lanes; padded bias columns are -1e30, f32)
    logits = jnp.dot(h, wo_ref[0], preferred_element_type=jnp.float32) + bo_ref[0]

    # numerically-stable softmax over the padded 128 lanes; padded columns -> exp == 0
    m = jnp.max(logits, axis=-1, keepdims=True)
    e = jnp.exp(logits - m)
    denom = jnp.sum(e, axis=-1, keepdims=True)
    # approx=False: downstream PPO consumes log-probs; cost is negligible here.
    out_ref[...] = (e * pl.reciprocal(denom, approx=False)).astype(out_ref.dtype)


@jax.jit
def _actor_forward_padded(x, head_idx, p):
    """Single compiled variant: runtime head selection, returns (B, 128) bf16 probs."""
    B, state_dim = x.shape

    # Batch tile: as large as possible (<= 512 rows) but sized so there are
    # >= 2 grid tiles whenever B allows -> both TensorCores run on v7x.
    half = (B + 1) // 2
    tb = max(8, min(512, _round_up(half, 8)))
    n_tiles = pl.cdiv(B, tb)          # ragged last block handled by Pallas

    grid_spec = pltpu.PrefetchScalarGridSpec(
        num_scalar_prefetch=1,
        grid=(n_tiles,),
        in_specs=[
            # batch-tiled activations (f32 straight from HBM, cast in-kernel)
            pl.BlockSpec((tb, state_dim), lambda i, act: (i, 0)),
            # weights / biases: resident in VMEM (constant block index, no re-DMA per step)
            pl.BlockSpec((state_dim, DENSE_DIM), lambda i, act: (0, 0)),
            pl.BlockSpec((DENSE_DIM, DENSE_DIM), lambda i, act: (0, 0)),
            pl.BlockSpec((DENSE_DIM, DENSE_DIM), lambda i, act: (0, 0)),
            pl.BlockSpec((DENSE_DIM, DENSE_DIM), lambda i, act: (0, 0)),
            pl.BlockSpec((4, DENSE_DIM), lambda i, act: (0, 0)),
            # head selected at runtime from the scalar-prefetch index
            pl.BlockSpec((1, DENSE_DIM, HEAD_PAD), lambda i, act: (act[0], 0, 0)),
            pl.BlockSpec((1, 1, HEAD_PAD), lambda i, act: (act[0], 0, 0)),
        ],
        out_specs=pl.BlockSpec((tb, HEAD_PAD), lambda i, act: (i, 0)),
    )

    return pl.pallas_call(
        _actor_kernel,
        # bf16 output halves HBM writeback (the dominant byte stream)
        out_shape=jax.ShapeDtypeStruct((B, HEAD_PAD), jnp.bfloat16),
        grid_spec=grid_spec,
        compiler_params=pltpu.CompilerParams(
            dimension_semantics=("parallel",),   # batch tiles shard across TCs on megacore
            vmem_limit_bytes=8 << 20,            # footprint at tb=512 is < 1 MiB
        ),
    )(head_idx, x, p["w1"], p["w2"], p["w3"], p["w4"],
      p["b_hidden"], p["heads_w"], p["heads_b"])


def actor_forward(x, packed, act=0):
    """Forward pass. `packed` comes from pack_actor_params. Returns (B, out_dim) bf16 probs."""
    if act not in _HEAD_INDEX:
        raise ValueError(f"invalid act={act}")
    head_idx = _HEAD_INDEX[act]
    out_dim = packed["head_dims"][head_idx]
    probs = _actor_forward_padded(
        x.astype(jnp.float32), jnp.asarray([head_idx], dtype=jnp.int32),
        packed["params"])
    # padded columns hold exactly zero probability, so this slice still sums to 1 per row
    return probs[:, :out_dim]


def init_actor_params(key, num_components, num_panels):
    """Deterministic synthetic parameter init (shapes match the PyTorch module), f32."""
    state_dim = num_components * 4
    panel_actions = 2 * num_panels

    def linear(k, fan_in, fan_out):
        kw, kb = jax.random.split(k)
        bound = 1.0 / jnp.sqrt(fan_in)
        # stored as (in, out): transpose of torch's (out, in) weight
        w = jax.random.uniform(kw, (fan_in, fan_out), jnp.float32, -bound, bound)
        b = jax.random.uniform(kb, (1, fan_out), jnp.float32, -bound, bound)
        return w, b

    keys = jax.random.split(key, 7)
    w1, b1 = linear(keys[0], state_dim, DENSE_DIM)
    w2, b2 = linear(keys[1], DENSE_DIM, DENSE_DIM)
    w3, b3 = linear(keys[2], DENSE_DIM, DENSE_DIM)
    w4, b4 = linear(keys[3], DENSE_DIM, DENSE_DIM)
    pos_w, pos_b = linear(keys[4], DENSE_DIM, POSITION_ACTIONS)
    rot_w, rot_b = linear(keys[5], DENSE_DIM, ROTATION_ACTIONS)
    pan_w, pan_b = linear(keys[6], DENSE_DIM, panel_actions)

    return dict(
        w1=w1, b1=b1, w2=w2, b2=b2, w3=w3, b3=b3, w4=w4, b4=b4,
        position_w=pos_w, position_b=pos_b,
        rotation_w=rot_w, rotation_b=rot_b,
        panel_w=pan_w, panel_b=pan_b,
    )


def pack_actor_params(params):
    """Pack raw f32 params into the kernel layout: bf16 weights, stacked padded heads.

    Invariant: heads_b MUST stay f32 — the -1e30 pad bias relies on f32 range
    so padded lanes carry exactly zero probability mass.
    """
    def pad_head(w, b):
        out_dim = w.shape[1]
        w_p = jnp.zeros((DENSE_DIM, HEAD_PAD), jnp.float32).at[:, :out_dim].set(w)
        # padded logit columns get a huge negative bias -> exp() underflows to exactly 0
        b_p = jnp.full((1, HEAD_PAD), -1e30, jnp.float32).at[:, :out_dim].set(b)
        return w_p, b_p, out_dim

    pan_w, pan_b, pan_d = pad_head(params["panel_w"], params["panel_b"])
    pos_w, pos_b, pos_d = pad_head(params["position_w"], params["position_b"])
    rot_w, rot_b, rot_d = pad_head(params["rotation_w"], params["rotation_b"])

    kernel_params = dict(
        w1=params["w1"].astype(jnp.bfloat16),
        w2=params["w2"].astype(jnp.bfloat16),
        w3=params["w3"].astype(jnp.bfloat16),
        w4=params["w4"].astype(jnp.bfloat16),
        b_hidden=jnp.concatenate(
            [params["b1"], params["b2"], params["b3"], params["b4"]], axis=0),  # (4,128) f32
        heads_w=jnp.stack([pan_w, pos_w, rot_w], axis=0).astype(jnp.bfloat16),  # (3,128,128)
        heads_b=jnp.stack([pan_b, pos_b, rot_b], axis=0),                       # (3,1,128) f32
    )
    return dict(params=kernel_params, head_dims=(pan_d, pos_d, rot_d))


def _reference_forward(x, packed, act):
    """Pure-JAX reference using the SAME packed (bf16) params for a sanity check."""
    p = packed["params"]
    head_idx = _HEAD_INDEX[act]
    out_dim = packed["head_dims"][head_idx]
    h = x.astype(jnp.bfloat16)
    for k, w in enumerate((p["w1"], p["w2"], p["w3"], p["w4"])):
        a = jnp.dot(h, w, preferred_element_type=jnp.float32) + p["b_hidden"][k]
        h = jnp.maximum(a, 0.0).astype(jnp.bfloat16)
    logits = (jnp.dot(h, p["heads_w"][head_idx], preferred_element_type=jnp.float32)
              + p["heads_b"][head_idx][0])
    probs = jax.nn.softmax(logits, axis=-1)
    return probs[:, :out_dim]


if __name__ == "__main__":
    num_components = 8      # -> state_dim = 32
    num_panels = 4          # -> panel_actions = 8

    key = jax.random.PRNGKey(0)
    k_params, k_x = jax.random.split(key)
    raw_params = init_actor_params(k_params, num_components, num_panels)
    packed = pack_actor_params(raw_params)

    ok = True
    # batch=8: single-tile path;  batch=25: two tiles + ragged last block
    for batch in (8, 25):
        x = jax.random.normal(k_x, (batch, num_components * 4), dtype=jnp.float32)
        for act in (0, 1, 2, 3):
            out = jax.block_until_ready(actor_forward(x, packed, act=act))
            ref = _reference_forward(x, packed, act)
            out_f32 = out.astype(jnp.float32)
            if out.shape != ref.shape:
                ok = False
            if not jnp.allclose(out_f32, ref, atol=1e-2, rtol=5e-2):
                ok = False
            # probabilities must sum to 1 per row (padded columns contribute exactly 0)
            if not jnp.allclose(jnp.sum(out_f32, axis=-1), 1.0, atol=1e-2):
                ok = False

    if ok:
        print("KERNEL_OK")
</pallas_src>

<mosaic_0001>
module attributes {stable_mosaic.version = 11 : i64} {
  func.func @_actor_kernel(%arg0: i32, %arg1: memref<1xi32, #tpu.memory_space<smem>>, %arg2: memref<8x32xf32, #tpu.memory_space<vmem>>, %arg3: memref<32x128xbf16, #tpu.memory_space<vmem>>, %arg4: memref<128x128xbf16, #tpu.memory_space<vmem>>, %arg5: memref<128x128xbf16, #tpu.memory_space<vmem>>, %arg6: memref<128x128xbf16, #tpu.memory_space<vmem>>, %arg7: memref<4x128xf32, #tpu.memory_space<vmem>>, %arg8: memref<1x128x128xbf16, #tpu.memory_space<vmem>>, %arg9: memref<1x1x128xf32, #tpu.memory_space<vmem>>, %arg10: memref<8x128xbf16, #tpu.memory_space<vmem>>) attributes {dimension_semantics = [#tpu.dimension_semantics<parallel>], iteration_bounds = array<i64: 1>, scalar_prefetch = 1 : i64, scratch_operands = 0 : i64, tpu.core_type = #tpu.core_type<tc>, window_params = [{transform_indices = @transform_0, window_bounds = array<i64: 8, 32>}, {pipeline_mode = #tpu.pipeline_mode<synchronous>, transform_indices = @transform_1, window_bounds = array<i64: 32, 128>}, {pipeline_mode = #tpu.pipeline_mode<synchronous>, transform_indices = @transform_2, window_bounds = array<i64: 128, 128>}, {pipeline_mode = #tpu.pipeline_mode<synchronous>, transform_indices = @transform_3, window_bounds = array<i64: 128, 128>}, {pipeline_mode = #tpu.pipeline_mode<synchronous>, transform_indices = @transform_4, window_bounds = array<i64: 128, 128>}, {pipeline_mode = #tpu.pipeline_mode<synchronous>, transform_indices = @transform_5, window_bounds = array<i64: 4, 128>}, {transform_indices = @transform_6, window_bounds = array<i64: 1, 128, 128>}, {transform_indices = @transform_7, window_bounds = array<i64: 1, 1, 128>}, {transform_indices = @transform_8, window_bounds = array<i64: 8, 128>}]} {
    %c0 = arith.constant 0 : index
    %c0_0 = arith.constant 0 : index
    %0 = vector.load %arg2[%c0, %c0_0] : memref<8x32xf32, #tpu.memory_space<vmem>>, vector<8x32xf32>
    %1 = arith.truncf %0 : vector<8x32xf32> to vector<8x32xbf16>
    %c0_1 = arith.constant 0 : index
    %c0_2 = arith.constant 0 : index
    %2 = vector.load %arg3[%c0_1, %c0_2] : memref<32x128xbf16, #tpu.memory_space<vmem>>, vector<32x128xbf16>
    %cst = arith.constant dense<0.000000e+00> : vector<8x128xf32>
    %3 = tpu.matmul %1, %2, %cst {dimension_numbers = #tpu.dot_dimension_numbers<[1], [0], [0], [1], [0, 0, 1, 1], [], []>} : vector<8x32xbf16>, vector<32x128xbf16>, vector<8x128xf32> -> vector<8x128xf32>
    %c0_3 = arith.constant 0 : index
    %c0_4 = arith.constant 0 : index
    %4 = vector.load %arg7[%c0_3, %c0_4] : memref<4x128xf32, #tpu.memory_space<vmem>>, vector<1x128xf32>
    %5 = vector.broadcast %4 : vector<1x128xf32> to vector<8x128xf32>
    %6 = arith.addf %3, %5 : vector<8x128xf32>
    %cst_5 = arith.constant 0.000000e+00 : f32
    %7 = vector.broadcast %cst_5 : f32 to vector<8x128xf32>
    %8 = arith.maximumf %6, %7 : vector<8x128xf32>
    %9 = arith.truncf %8 : vector<8x128xf32> to vector<8x128xbf16>
    %c0_6 = arith.constant 0 : index
    %c0_7 = arith.constant 0 : index
    %10 = vector.load %arg4[%c0_6, %c0_7] : memref<128x128xbf16, #tpu.memory_space<vmem>>, vector<128x128xbf16>
    %cst_8 = arith.constant dense<0.000000e+00> : vector<8x128xf32>
    %11 = tpu.matmul %9, %10, %cst_8 {dimension_numbers = #tpu.dot_dimension_numbers<[1], [0], [0], [1], [0, 0, 1, 1], [], []>} : vector<8x128xbf16>, vector<128x128xbf16>, vector<8x128xf32> -> vector<8x128xf32>
    %c1 = arith.constant 1 : index
    %c0_9 = arith.constant 0 : index
    %12 = vector.load %arg7[%c1, %c0_9] : memref<4x128xf32, #tpu.memory_space<vmem>>, vector<1x128xf32>
    %13 = vector.broadcast %12 : vector<1x128xf32> to vector<8x128xf32>
    %14 = arith.addf %11, %13 : vector<8x128xf32>
    %cst_10 = arith.constant 0.000000e+00 : f32
    %15 = vector.broadcast %cst_10 : f32 to vector<8x128xf32>
    %16 = arith.maximumf %14, %15 : vector<8x128xf32>
    %17 = arith.truncf %16 : vector<8x128xf32> to vector<8x128xbf16>
    %c0_11 = arith.constant 0 : index
    %c0_12 = arith.constant 0 : index
    %18 = vector.load %arg5[%c0_11, %c0_12] : memref<128x128xbf16, #tpu.memory_space<vmem>>, vector<128x128xbf16>
    %cst_13 = arith.constant dense<0.000000e+00> : vector<8x128xf32>
    %19 = tpu.matmul %17, %18, %cst_13 {dimension_numbers = #tpu.dot_dimension_numbers<[1], [0], [0], [1], [0, 0, 1, 1], [], []>} : vector<8x128xbf16>, vector<128x128xbf16>, vector<8x128xf32> -> vector<8x128xf32>
    %c2 = arith.constant 2 : index
    %c0_14 = arith.constant 0 : index
    %20 = vector.load %arg7[%c2, %c0_14] : memref<4x128xf32, #tpu.memory_space<vmem>>, vector<1x128xf32>
    %21 = vector.broadcast %20 : vector<1x128xf32> to vector<8x128xf32>
    %22 = arith.addf %19, %21 : vector<8x128xf32>
    %cst_15 = arith.constant 0.000000e+00 : f32
    %23 = vector.broadcast %cst_15 : f32 to vector<8x128xf32>
    %24 = arith.maximumf %22, %23 : vector<8x128xf32>
    %25 = arith.truncf %24 : vector<8x128xf32> to vector<8x128xbf16>
    %c0_16 = arith.constant 0 : index
    %c0_17 = arith.constant 0 : index
    %26 = vector.load %arg6[%c0_16, %c0_17] : memref<128x128xbf16, #tpu.memory_space<vmem>>, vector<128x128xbf16>
    %cst_18 = arith.constant dense<0.000000e+00> : vector<8x128xf32>
    %27 = tpu.matmul %25, %26, %cst_18 {dimension_numbers = #tpu.dot_dimension_numbers<[1], [0], [0], [1], [0, 0, 1, 1], [], []>} : vector<8x128xbf16>, vector<128x128xbf16>, vector<8x128xf32> -> vector<8x128xf32>
    %c3 = arith.constant 3 : index
    %c0_19 = arith.constant 0 : index
    %28 = vector.load %arg7[%c3, %c0_19] : memref<4x128xf32, #tpu.memory_space<vmem>>, vector<1x128xf32>
    %29 = vector.broadcast %28 : vector<1x128xf32> to vector<8x128xf32>
    %30 = arith.addf %27, %29 : vector<8x128xf32>
    %cst_20 = arith.constant 0.000000e+00 : f32
    %31 = vector.broadcast %cst_20 : f32 to vector<8x128xf32>
    %32 = arith.maximumf %30, %31 : vector<8x128xf32>
    %33 = arith.truncf %32 : vector<8x128xf32> to vector<8x128xbf16>
    %c0_21 = arith.constant 0 : index
    %c0_22 = arith.constant 0 : index
    %c0_23 = arith.constant 0 : index
    %34 = vector.load %arg8[%c0_21, %c0_22, %c0_23] : memref<1x128x128xbf16, #tpu.memory_space<vmem>>, vector<1x128x128xbf16>
    %35 = vector.shape_cast %34 : vector<1x128x128xbf16> to vector<128x128xbf16>
    %cst_24 = arith.constant dense<0.000000e+00> : vector<8x128xf32>
    %36 = tpu.matmul %33, %35, %cst_24 {dimension_numbers = #tpu.dot_dimension_numbers<[1], [0], [0], [1], [0, 0, 1, 1], [], []>} : vector<8x128xbf16>, vector<128x128xbf16>, vector<8x128xf32> -> vector<8x128xf32>
    %c0_25 = arith.constant 0 : index
    %c0_26 = arith.constant 0 : index
    %c0_27 = arith.constant 0 : index
    %37 = vector.load %arg9[%c0_25, %c0_26, %c0_27] : memref<1x1x128xf32, #tpu.memory_space<vmem>>, vector<1x1x128xf32>
    %38 = vector.shape_cast %37 : vector<1x1x128xf32> to vector<1x128xf32>
    %39 = vector.broadcast %38 : vector<1x128xf32> to vector<8x128xf32>
    %40 = arith.addf %36, %39 : vector<8x128xf32>
    %cst_28 = arith.constant dense<0xFF800000> : vector<8xf32>
    %41 = vector.multi_reduction <maximumf>, %40, %cst_28 [1] : vector<8x128xf32> to vector<8xf32>
    %42 = vector.shape_cast %41 : vector<8xf32> to vector<8x1xf32>
    %43 = vector.broadcast %42 : vector<8x1xf32> to vector<8x128xf32>
    %44 = arith.subf %40, %43 : vector<8x128xf32>
    %45 = math.exp %44 : vector<8x128xf32>
    %cst_29 = arith.constant dense<0.000000e+00> : vector<8xf32>
    %46 = vector.multi_reduction <add>, %45, %cst_29 [1] : vector<8x128xf32> to vector<8xf32>
    %47 = vector.shape_cast %46 : vector<8xf32> to vector<8x1xf32>
    %48 = tpu.reciprocal %47 : vector<8x1xf32> -> vector<8x1xf32>
    %49 = vector.broadcast %48 : vector<8x1xf32> to vector<8x128xf32>
    %50 = arith.mulf %45, %49 : vector<8x128xf32>
    %51 = arith.truncf %50 : vector<8x128xf32> to vector<8x128xbf16>
    %c0_30 = arith.constant 0 : index
    %c0_31 = arith.constant 0 : index
    %52 = vector.load %arg10[%c0_30, %c0_31] : memref<8x128xbf16, #tpu.memory_space<vmem>>, vector<8x128xbf16>
    tpu.vector_store %arg10[%c0_30, %c0_31], %51 {strides = array<i32>} : memref<8x128xbf16, #tpu.memory_space<vmem>>, vector<8x128xbf16>,
    return
  }
  func.func @transform_0(%arg0: i32, %arg1: memref<1xi32, #tpu.memory_space<smem>>) -> (i32, i32) {
    %c0_i32 = arith.constant 0 : i32
    %c0_i32_0 = arith.constant 0 : i32
    return %arg0, %c0_i32 : i32, i32
  }
  func.func @transform_1(%arg0: i32, %arg1: memref<1xi32, #tpu.memory_space<smem>>) -> (i32, i32) {
    %c0_i32 = arith.constant 0 : i32
    %c0_i32_0 = arith.constant 0 : i32
    %c0_i32_1 = arith.constant 0 : i32
    return %c0_i32, %c0_i32_0 : i32, i32
  }
  func.func @transform_2(%arg0: i32, %arg1: memref<1xi32, #tpu.memory_space<smem>>) -> (i32, i32) {
    %c0_i32 = arith.constant 0 : i32
    %c0_i32_0 = arith.constant 0 : i32
    %c0_i32_1 = arith.constant 0 : i32
    return %c0_i32, %c0_i32_0 : i32, i32
  }
  func.func @transform_3(%arg0: i32, %arg1: memref<1xi32, #tpu.memory_space<smem>>) -> (i32, i32) {
    %c0_i32 = arith.constant 0 : i32
    %c0_i32_0 = arith.constant 0 : i32
    %c0_i32_1 = arith.constant 0 : i32
    return %c0_i32, %c0_i32_0 : i32, i32
  }
  func.func @transform_4(%arg0: i32, %arg1: memref<1xi32, #tpu.memory_space<smem>>) -> (i32, i32) {
    %c0_i32 = arith.constant 0 : i32
    %c0_i32_0 = arith.constant 0 : i32
    %c0_i32_1 = arith.constant 0 : i32
    return %c0_i32, %c0_i32_0 : i32, i32
  }
  func.func @transform_5(%arg0: i32, %arg1: memref<1xi32, #tpu.memory_space<smem>>) -> (i32, i32) {
    %c0_i32 = arith.constant 0 : i32
    %c0_i32_0 = arith.constant 0 : i32
    %c0_i32_1 = arith.constant 0 : i32
    return %c0_i32, %c0_i32_0 : i32, i32
  }
  func.func @transform_6(%arg0: i32, %arg1: memref<1xi32, #tpu.memory_space<smem>>) -> (i32, i32, i32) {
    %c0 = arith.constant 0 : index
    %0 = memref.load %arg1[%c0] : memref<1xi32, #tpu.memory_space<smem>>
    %c0_i32 = arith.constant 0 : i32
    %c0_i32_0 = arith.constant 0 : i32
    %c0_i32_1 = arith.constant 0 : i32
    return %0, %c0_i32, %c0_i32_0 : i32, i32, i32
  }
  func.func @transform_7(%arg0: i32, %arg1: memref<1xi32, #tpu.memory_space<smem>>) -> (i32, i32, i32) {
    %c0 = arith.constant 0 : index
    %0 = memref.load %arg1[%c0] : memref<1xi32, #tpu.memory_space<smem>>
    %c0_i32 = arith.constant 0 : i32
    %c0_i32_0 = arith.constant 0 : i32
    %c0_i32_1 = arith.constant 0 : i32
    return %0, %c0_i32, %c0_i32_0 : i32, i32, i32
  }
  func.func @transform_8(%arg0: i32, %arg1: memref<1xi32, #tpu.memory_space<smem>>) -> (i32, i32) {
    %c0_i32 = arith.constant 0 : i32
    %c0_i32_0 = arith.constant 0 : i32
    return %arg0, %c0_i32 : i32, i32
  }
}

</mosaic_0001>

<bundles_post_ra>
// kernel: _actor_forward_padded.1
= control target key start
LH: loop header
LB: loop body
LE: loop exit
PB: predicated region body
PF: predicated region fallthrough
CT: control target
= control target key end

     0   :  { %15 = vsyncpa [#allocation5], 0  ;;  %s1245_s0 = inlined_call_operand.<no memory space> [shape: s32[1], index: 0, kind: input, shape index: {}]   ;;  %s1246_s1 = inlined_call_operand.hbm [shape: f32[8,32], index: 1, kind: input, shape index: {}]   ;;  %s1247_s2 = inlined_call_operand.hbm [shape: bf16[32,128], index: 2, kind: input, shape index: {}]   ;;  %s1248_s3 = inlined_call_operand.hbm [shape: bf16[128,128], index: 3, kind: input, shape index: {}]   ;;  %s1249_s4 = inlined_call_operand.hbm [shape: bf16[128,128], index: 4, kind: input, shape index: {}]   ;;  %s1250_s5 = inlined_call_operand.hbm [shape: bf16[128,128], index: 5, kind: input, shape index: {}]   ;;  %s1251_s6 = inlined_call_operand.hbm [shape: f32[4,128], index: 6, kind: input, shape index: {}]   ;;  %s1252_s7 = inlined_call_operand.hbm [shape: bf16[3,128,128], index: 7, kind: input, shape index: {}]   ;;  %s1253_s8 = inlined_call_operand.vmem [shape: f32[3,1,128], index: 8, kind: input, shape index: {}]   ;;  %s1254_s9 = inlined_call_operand.hbm [shape: bf16[8,128], index: 9, kind: output, shape index: {}]  }
   0x1   :  { %16 = vsyncpa [#allocation8], 0 }
   0x2   :  { %17 = vsyncpa [#allocation11], 0 }
   0x3   :  { %18 = vsyncpa [#allocation14], 0 }
   0x4   :  { %19 = vsyncpa [#allocation6], 0  ;;  %s1082_s30 = smov [#allocation7]  }
   0x5   :  { %s35_s10 = sshll.u32 %s1082_s30, 4  ;;  %s36_s10 = int_to_ptr.vmem [resolvable:$true] %s35_s10 }
   0x6   :  { %s918_s11 = scalar_lea.vmem %s36_s10, 256  ;;  %p923_p1 = scmp.lt.s32.totalorder %s36_s10, %s36_s10 }
   0x7   :  { %p919_p0 = scmp.ne.s32.totalorder %s36_s10, %s918_s11  ;;  %p924_p2 = scmp.lt.s32.totalorder %s918_s11, %s918_s11 }
   0x9   :  { %p925_p3 = por %p924_p2, %p923_p1 }
   0xb   :  { %p926_p4 = pnand %p925_p3, %p919_p0 }
   0xd   :  { %929 = shalt.err (!%p926_p4)
}
   0xe   :  { %s1083_s12 = smov 64   ;;  %s1084_s13 = smov 4  }
   0xf   :  { %41 = dma.hbm_to_vmem [thread:$0]  %s1247_s2, 256, %s36_s10, [#allocation8], %s1083_s12, %s1083_s12, %s1084_s13  }
  0x10   :  { %s1085_s16 = smov [#allocation10]   ;;  %s1086_s18 = smov [#allocation13]  }
  0x11   :  { %s59_s17 = sshll.u32 %s1085_s16, 4  ;;  %s84_s19 = sshll.u32 %s1086_s18, 4  ;;  %s60_s17 = int_to_ptr.vmem [resolvable:$true] %s59_s17  ;;  %s85_s19 = int_to_ptr.vmem [resolvable:$true] %s84_s19 }
  0x12   :  { %s938_s20 = scalar_lea.vmem %s60_s17, 1024  ;;  %p943_p6 = scmp.lt.s32.totalorder %s60_s17, %s60_s17 }
  0x13   :  { %p939_p5 = scmp.ne.s32.totalorder %s60_s17, %s938_s20  ;;  %p944_p7 = scmp.lt.s32.totalorder %s938_s20, %s938_s20 }
  0x15   :  { %p945_p8 = por %p944_p7, %p943_p6 }
  0x17   :  { %p946_p9 = pnand %p945_p8, %p939_p5 }
  0x19   :  { %949 = shalt.err (!%p946_p9)
}
  0x1a   :  { %65 = dma.hbm_to_vmem [thread:$0]  %s1249_s4, 1024, %s60_s17, [#allocation11], %s1083_s12, %s1083_s12, %s1084_s13  }
  0x1b   :  { %s958_s2 = scalar_lea.vmem %s85_s19, 64  ;;  %p963_p11 = scmp.lt.s32.totalorder %s85_s19, %s85_s19 }
  0x1c   :  { %p959_p10 = scmp.ne.s32.totalorder %s85_s19, %s958_s2  ;;  %p964_p12 = scmp.lt.s32.totalorder %s958_s2, %s958_s2 }
  0x1e   :  { %p965_p13 = por %p964_p12, %p963_p11 }
  0x20   :  { %p966_p0 = pnand %p965_p13, %p959_p10 }
  0x22   :  { %969 = shalt.err (!%p966_p0)
}
  0x23   :  { %87 = dma.hbm_to_vmem [thread:$0]  %s1251_s6, 64, %s85_s19, [#allocation14]  }
  0x24   :  { %s1087_s25 = smov [#allocation4]   ;;  %s1088_s27 = smov [#allocation9]  }
  0x25   :  { %s26_s26 = sshll.u32 %s1087_s25, 4  ;;  %s47_s28 = sshll.u32 %s1088_s27, 4  ;;  %s27_s26 = int_to_ptr.vmem [resolvable:$true] %s26_s26  ;;  %s48_s28 = int_to_ptr.vmem [resolvable:$true] %s47_s28 }
  0x26   :  { %s978_s29 = scalar_lea.vmem %s27_s26, 128  ;;  %p983_p2 = scmp.lt.s32.totalorder %s27_s26, %s27_s26 }
  0x27   :  { %p979_p1 = scmp.ne.s32.totalorder %s27_s26, %s978_s29  ;;  %p984_p3 = scmp.lt.s32.totalorder %s978_s29, %s978_s29 }
  0x29   :  { %p985_p4 = por %p984_p3, %p983_p2 }
  0x2b   :  { %p986_p5 = pnand %p985_p4, %p979_p1 }
  0x2d   :  { %989 = shalt.err (!%p986_p5)
}
  0x2e   :  { %29 = dma.hbm_to_vmem [thread:$0]  %s1246_s1, 128, %s27_s26, [#allocation5]  }
  0x2f   :  { %s998_s10 = scalar_lea.vmem %s48_s28, 1024  ;;  %p1003_p7 = scmp.lt.s32.totalorder %s48_s28, %s48_s28 }
  0x30   :  { %p999_p6 = scmp.ne.s32.totalorder %s48_s28, %s998_s10  ;;  %p1004_p8 = scmp.lt.s32.totalorder %s998_s10, %s998_s10 }
  0x32   :  { %p1005_p9 = por %p1004_p8, %p1003_p7 }
  0x34   :  { %p1006_p10 = pnand %p1005_p9, %p999_p6 }
  0x36   :  { %1009 = shalt.err (!%p1006_p10)
}
  0x37   :  { %53 = dma.hbm_to_vmem [thread:$0]  %s1248_s3, 1024, %s48_s28, [#allocation8], %s1083_s12, %s1083_s12, %s1084_s13  }
  0x38   :  { %s1089_s14 = smov [#allocation12]   ;;  %s732_s1 = sshll.u32 %s1245_s0, 10 }
  0x39   :  { %s71_s15 = sshll.u32 %s1089_s14, 4  ;;  %s72_s15 = int_to_ptr.vmem [resolvable:$true] %s71_s15 }
  0x3a   :  { %s1018_s18 = scalar_lea.vmem %s72_s15, 1024  ;;  %p1023_p12 = scmp.lt.s32.totalorder %s72_s15, %s72_s15 }
  0x3b   :  { %p1019_p11 = scmp.ne.s32.totalorder %s72_s15, %s1018_s18  ;;  %p1024_p13 = scmp.lt.s32.totalorder %s1018_s18, %s1018_s18 }
  0x3d   :  { %p1025_p0 = por %p1024_p13, %p1023_p12 }
  0x3f   :  { %p1026_p1 = pnand %p1025_p0, %p1019_p11 }
  0x41   :  { %1029 = shalt.err (!%p1026_p1)
}
  0x42   :  { %77 = dma.hbm_to_vmem [thread:$0]  %s1250_s5, 1024, %s72_s15, [#allocation11], %s1083_s12, %s1083_s12, %s1084_s13  }
  0x43   :  { %s96_s22 = scalar_lea.hbm %s1252_s7, %s732_s1  ;;  %s1090_s2 = smov [#allocation15]  }
  0x44   :  { %s97_s23 = sshll.u32 %s1090_s2, 4  ;;  %s1030_s24 = scalar_lea.hbm %s96_s22, 1024  ;;  %s98_s23 = int_to_ptr.vmem [resolvable:$true] %s97_s23 }
  0x45   :  { %p1031_p2 = scmp.ne.s32.totalorder %s96_s22, %s1030_s24  ;;  %s1032_s27 = scalar_lea.hbm %s1252_s7, 3072 }
  0x46   :  { %p1033_p3 = scmp.lt.s32.totalorder %s96_s22, %s1252_s7  ;;  %p1034_p4 = scmp.lt.s32.totalorder %s1032_s27, %s1030_s24 }
  0x48   :  { %p1035_p5 = por %p1034_p4, %p1033_p3 }
  0x4a   :  { %p1036_p6 = pnand %p1035_p5, %p1031_p2 }
  0x4c   :  { %1039 = shalt.err (!%p1036_p6)
}
  0x4d   :  { %s1040_s5 = scalar_lea.vmem %s98_s23, 1024  ;;  %p1045_p8 = scmp.lt.s32.totalorder %s98_s23, %s98_s23 }
  0x4e   :  { %p1041_p7 = scmp.ne.s32.totalorder %s98_s23, %s1040_s5  ;;  %p1046_p9 = scmp.lt.s32.totalorder %s1040_s5, %s1040_s5 }
  0x50   :  { %p1047_p10 = por %p1046_p9, %p1045_p8 }
  0x52   :  { %p1048_p11 = pnand %p1047_p10, %p1041_p7 }
  0x54   :  { %1051 = shalt.err (!%p1048_p11)
}
  0x55   :  { %103 = dma.hbm_to_vmem [thread:$0]  %s96_s22, 1024, %s98_s23, [#allocation14], %s1083_s12, %s1083_s12, %s1084_s13  }
  0x56   :  { %1072 = dma.done.wait [#allocation5], 128  }
  0x57   :  { %1073 = vsyncadd [#allocation5], 4294967168 }
  0x58   :  { %1074 = dma.done.wait [#allocation8], 1280  }
  0x59   :  { %1075 = vsyncadd [#allocation8], 4294966016 }
  0x5a   :  { %1076 = dma.done.wait [#allocation11], 2048  }
  0x5b   :  { %1077 = vsyncadd [#allocation11], 4294965248 }
  0x5c   :  { %1078 = dma.done.wait [#allocation14], 1088  }
  0x5d   :  { %1079 = vsyncadd [#allocation14], 4294966208  ;;  %v1091_v0 = vmov 0.0   ;;  %vm1092_vm0 = vmmov 0   ;;  %v872_v1 = vld [vmem:[#allocation7 + $0x8] sm:$0xff]   ;;  %v873_v2 = vld [vmem:[#allocation7] sm:$0xff]  }
  0x5e   :  { %772 = vmatprep.subr.bf16.mxu0 %v1091_v0  ;;  %776 = vmatprep.mubr.msk.bf16.mxu0 %vm1092_vm0, %v1091_v0  ;;  %v143_v3 = vld [vmem:[#allocation4] sm:$0xff]  ;;  %v874_v4 = vld [vmem:[#allocation9 + $0x38] sm:$0xff]   ;;  %v875_v6 = vld [vmem:[#allocation9 + $0x30] sm:$0xff]   ;;  %vm166_vm1 = vcmask 261120   ;;  %p138_p12 = scmp.lt.s32.totalorder %s1245_s0, 2  ;;  %s1093_s11 = smov [#allocation16]  }
  0x5f   :  { %780 = vmatprep.subr.bf16.mxu1 %v1091_v0  ;;  %796 = vmatprep.mubr.msk.bf16.mxu1 %vm1092_vm0, %v1091_v0  ;;  %v144_v5 = vpack.c.bf16 %v143_v3, %v143_v3  ;;  %v876_v7 = vld [vmem:[#allocation9 + $0x28] sm:$0xff]   ;;  %v877_v8 = vld [vmem:[#allocation9 + $0x20] sm:$0xff]   ;;  %v878_v9 = vld [vmem:[#allocation9 + $0x18] sm:$0xff]   ;;  %s673_s14 = sshll.u32 %s1093_s11, 4  ;;  %s674_s14 = int_to_ptr.vmem [resolvable:$true] %s673_s14 }
  0x60   :  { %773 = vmatpush3.bf16.msra.mxu0 %v872_v1  ;;  %781 = vmatpush3.bf16.msra.mxu1 %v874_v4  ;;  %v879_v10 = vld [vmem:[#allocation9 + $0x10] sm:$0xff]   ;;  %v880_v11 = vld [vmem:[#allocation9 + $0x8] sm:$0xff]   ;;  %v881_v12 = vld [vmem:[#allocation9] sm:$0xff]   ;;  %s1256_s0 = smov (!%p138_p12, %s1245_s0), 2  ;;  %p1057_p0 = scmp.lt.s32.totalorder %s674_s14, %s674_s14 }
  0x61   :  { %774 = vmatprep.subr.bf16.mxu0 %v1091_v0  ;;  %782 = vmatprep.subr.bf16.mxu1 %v1091_v0  ;;  %v882_v13 = vld [vmem:[#allocation10 + $0x38] sm:$0xff]   ;;  %v883_v14 = vld [vmem:[#allocation10 + $0x30] sm:$0xff]   ;;  %v884_v15 = vld [vmem:[#allocation10 + $0x28] sm:$0xff]   ;;  %s140_s6 = scalar_lea.vmem %s1253_s8, %s1256_s0  ;;  %s1052_s0 = scalar_lea.vmem %s674_s14, 64 }
  0x62   :  { %v885_v16 = vld [vmem:[#allocation10 + $0x20] sm:$0xff]   ;;  %v886_v17 = vld [vmem:[#allocation10 + $0x18] sm:$0xff]   ;;  %v887_v18 = vld [vmem:[#allocation10 + $0x10] sm:$0xff]   ;;  %p1053_p13 = scmp.ne.s32.totalorder %s674_s14, %s1052_s0  ;;  %p1058_p1 = scmp.lt.s32.totalorder %s1052_s0, %s1052_s0 }
  0x63   :  { %v692_v19 = vld [vmem:[#allocation13] ss:$0 sm:$0xff]  ;;  %v888_v27 = vld [vmem:[#allocation10 + $0x8] sm:$0xff]   ;;  %v890_v29 = vld [vmem:[#allocation12 + $0x38] sm:$0xff]  }
  0x64   :  { %775 = vmatpush3.bf16.msra.mxu0 %v873_v2  ;;  %783 = vmatpush3.bf16.msra.mxu1 %v875_v6  ;;  %v889_v28 = vld [vmem:[#allocation10] sm:$0xff]   ;;  %v891_v30 = vld [vmem:[#allocation12 + $0x30] sm:$0xff]   ;;  %v892_v31 = vld [vmem:[#allocation12 + $0x28] sm:$0xff]   ;;  %p1059_p2 = por %p1058_p1, %p1057_p0 }
  0x65   :  { %800 = vmatprep.subr.bf16.mxu0 %v1091_v0  ;;  %784 = vmatprep.subr.bf16.mxu1 %v1091_v0  ;;  %v893_v32 = vld [vmem:[#allocation12 + $0x20] sm:$0xff]   ;;  %v894_v33 = vld [vmem:[#allocation12 + $0x18] sm:$0xff]   ;;  %v895_v34 = vld [vmem:[#allocation12 + $0x10] sm:$0xff]  }
  0x66   :  { %v696_v35 = vld [vmem:[#allocation13 + $0x1] ss:$0 sm:$0xff]  ;;  %v896_v43 = vld [vmem:[#allocation12 + $0x8] sm:$0xff]   ;;  %v899_v46 = vld [vmem:[#allocation15 + $0x30] sm:$0xff]   ;;  %p1060_p3 = pnand %p1059_p2, %p1053_p13 }
  0x67   :  { %777 = vmatmul.mubr.msk.bf16.vlgmr.msra.gmra.mxu0 %vm166_vm1, %v144_v5  ;;  %v897_v44 = vld [vmem:[#allocation12] sm:$0xff]   ;;  %v900_v47 = vld [vmem:[#allocation15 + $0x28] sm:$0xff]   ;;  %v903_v50 = vld [vmem:[#allocation15 + $0x10] sm:$0xff]  }
  0x68   :  { %816 = vmatprep.mubr.msk.bf16.mxu0 %vm1092_vm0, %v1091_v0  ;;  %785 = vmatpush3.bf16.msra.mxu1 %v876_v7  ;;  %v898_v45 = vld [vmem:[#allocation15 + $0x38] sm:$0xff]   ;;  %v901_v48 = vld [vmem:[#allocation15 + $0x20] sm:$0xff]   ;;  %v904_v59 = vld [vmem:[#allocation15 + $0x8] sm:$0xff]  }
  0x69   :  { %786 = vmatprep.subr.bf16.mxu1 %v1091_v0  ;;  %801 = vmatpush3.bf16.msra.mxu0 %v882_v13  ;;  %v902_v49 = vld [vmem:[#allocation15 + $0x18] sm:$0xff]   ;;  %v905_v60 = vld [vmem:[#allocation15] sm:$0xff]  }
  0x6a   :  { %802 = vmatprep.subr.bf16.mxu0 %v1091_v0  ;;  %v705_v51 = vld [vmem:[#allocation13 + $0x2] ss:$0 sm:$0xff]  ;;  %v714_v61 = vld [vmem:[#allocation13 + $0x3] ss:$0 sm:$0xff] }
  0x6c   :  { %787 = vmatpush3.bf16.msra.mxu1 %v877_v8 }
  0x6d   :  { %788 = vmatprep.subr.bf16.mxu1 %v1091_v0  ;;  %803 = vmatpush3.bf16.msra.mxu0 %v883_v14 }
  0x6e   :  { %804 = vmatprep.subr.bf16.mxu0 %v1091_v0 }
  0x70   :  { %789 = vmatpush3.bf16.msra.mxu1 %v878_v9 }
  0x71   :  { %790 = vmatprep.subr.bf16.mxu1 %v1091_v0  ;;  %805 = vmatpush3.bf16.msra.mxu0 %v884_v15 }
  0x72   :  { %806 = vmatprep.subr.bf16.mxu0 %v1091_v0 }
  0x74   :  { %791 = vmatpush3.bf16.msra.mxu1 %v879_v10 }
  0x75   :  { %792 = vmatprep.subr.bf16.mxu1 %v1091_v0  ;;  %807 = vmatpush3.bf16.msra.mxu0 %v885_v16 }
  0x76   :  { %808 = vmatprep.subr.bf16.mxu0 %v1091_v0 }
  0x78   :  { %793 = vmatpush3.bf16.msra.mxu1 %v880_v11 }
  0x79   :  { %794 = vmatprep.subr.bf16.mxu1 %v1091_v0  ;;  %809 = vmatpush3.bf16.msra.mxu0 %v886_v17 }
  0x7a   :  { %810 = vmatprep.subr.bf16.mxu0 %v1091_v0 }
  0x7c   :  { %795 = vmatpush3.bf16.msra.mxu1 %v881_v12 }
  0x7d   :  { %820 = vmatprep.subr.bf16.mxu1 %v1091_v0  ;;  %811 = vmatpush3.bf16.msra.mxu0 %v887_v18 }
  0x7e   :  { %812 = vmatprep.subr.bf16.mxu0 %v1091_v0 }
  0x81   :  { %813 = vmatpush3.bf16.msra.mxu0 %v888_v27 }
  0x82   :  { %814 = vmatprep.subr.bf16.mxu0 %v1091_v0 }
  0x85   :  { %815 = vmatpush3.bf16.msra.mxu0 %v889_v28 }
  0x86   :  { %840 = vmatprep.subr.bf16.mxu0 %v1091_v0 }
 0x127   :  { %v204_v20 = vpop.f32.mrf.mxu0 }
 0x128   :  { %v205_v21 = vadd.f32 %v692_v19, %v204_v20 }
 0x129   :  { %v778_v22 = vpop.f32.mrf.mxu0 }
 0x12a   :  { %v210_v23 = vmax.f32 %v205_v21, 0.0 }
 0x12b   :  { %v207_v24 = vpop.f32.mrf.mxu0 }
 0x12c   :  { %v211_v25 = vpack.c.bf16 %v210_v23, %v210_v23 }
 0x12d   :  { %v779_v26 = vpop.f32.mrf.mxu0 }
 0x12e   :  { %797 = vmatmul.mubr.bf16.vlgmr.msra.gmra.mxu1 %v211_v25 }
 0x12f   :  { %836 = vmatprep.mubr.msk.bf16.mxu1 %vm1092_vm0, %v1091_v0  ;;  %821 = vmatpush3.bf16.msra.mxu1 %v890_v29 }
 0x130   :  { %822 = vmatprep.subr.bf16.mxu1 %v1091_v0 }
 0x133   :  { %823 = vmatpush3.bf16.msra.mxu1 %v891_v30 }
 0x134   :  { %824 = vmatprep.subr.bf16.mxu1 %v1091_v0 }
 0x137   :  { %825 = vmatpush3.bf16.msra.mxu1 %v892_v31 }
 0x138   :  { %826 = vmatprep.subr.bf16.mxu1 %v1091_v0 }
 0x13b   :  { %827 = vmatpush3.bf16.msra.mxu1 %v893_v32 }
 0x13c   :  { %828 = vmatprep.subr.bf16.mxu1 %v1091_v0 }
 0x13f   :  { %829 = vmatpush3.bf16.msra.mxu1 %v894_v33 }
 0x140   :  { %830 = vmatprep.subr.bf16.mxu1 %v1091_v0 }
 0x143   :  { %831 = vmatpush3.bf16.msra.mxu1 %v895_v34 }
 0x144   :  { %832 = vmatprep.subr.bf16.mxu1 %v1091_v0 }
 0x147   :  { %833 = vmatpush3.bf16.msra.mxu1 %v896_v43 }
 0x148   :  { %834 = vmatprep.subr.bf16.mxu1 %v1091_v0 }
 0x14b   :  { %835 = vmatpush3.bf16.msra.mxu1 %v897_v44 }
 0x1ee   :  { %v315_v36 = vpop.f32.mrf.mxu1 }
 0x1ef   :  { %v316_v37 = vadd.f32 %v696_v35, %v315_v36 }
 0x1f0   :  { %v798_v38 = vpop.f32.mrf.mxu1 }
 0x1f1   :  { %v321_v39 = vmax.f32 %v316_v37, 0.0 }
 0x1f2   :  { %v318_v40 = vpop.f32.mrf.mxu1 }
 0x1f3   :  { %v322_v41 = vpack.c.bf16 %v321_v39, %v321_v39 }
 0x1f4   :  { %v799_v42 = vpop.f32.mrf.mxu1 }
 0x1f5   :  { %817 = vmatmul.mubr.bf16.vlgmr.msra.gmra.mxu0 %v322_v41 }
 0x1f6   :  { %856 = vmatprep.mubr.msk.bf16.mxu0 %vm1092_vm0, %v1091_v0  ;;  %841 = vmatpush3.bf16.msra.mxu0 %v898_v45 }
 0x1f7   :  { %842 = vmatprep.subr.bf16.mxu0 %v1091_v0 }
 0x1fa   :  { %843 = vmatpush3.bf16.msra.mxu0 %v899_v46 }
 0x1fb   :  { %844 = vmatprep.subr.bf16.mxu0 %v1091_v0 }
 0x1fe   :  { %845 = vmatpush3.bf16.msra.mxu0 %v900_v47 }
 0x1ff   :  { %846 = vmatprep.subr.bf16.mxu0 %v1091_v0 }
 0x202   :  { %847 = vmatpush3.bf16.msra.mxu0 %v901_v48 }
 0x203   :  { %848 = vmatprep.subr.bf16.mxu0 %v1091_v0 }
 0x206   :  { %849 = vmatpush3.bf16.msra.mxu0 %v902_v49 }
 0x207   :  { %850 = vmatprep.subr.bf16.mxu0 %v1091_v0 }
 0x20a   :  { %851 = vmatpush3.bf16.msra.mxu0 %v903_v50 }
 0x20b   :  { %852 = vmatprep.subr.bf16.mxu0 %v1091_v0 }
 0x20e   :  { %853 = vmatpush3.bf16.msra.mxu0 %v904_v59 }
 0x20f   :  { %854 = vmatprep.subr.bf16.mxu0 %v1091_v0  ;;  %v723_v0 = vld [vmem:[%s140_s6] ss:$0 sm:$0xff] }
 0x212   :  { %855 = vmatpush3.bf16.msra.mxu0 %v905_v60 }
 0x2b5   :  { %v426_v52 = vpop.f32.mrf.mxu0 }
 0x2b6   :  { %v427_v53 = vadd.f32 %v705_v51, %v426_v52 }
 0x2b7   :  { %v818_v54 = vpop.f32.mrf.mxu0 }
 0x2b8   :  { %v432_v55 = vmax.f32 %v427_v53, 0.0 }
 0x2b9   :  { %v429_v56 = vpop.f32.mrf.mxu0 }
 0x2ba   :  { %v433_v57 = vpack.c.bf16 %v432_v55, %v432_v55 }
 0x2bb   :  { %v819_v58 = vpop.f32.mrf.mxu0 }
 0x2bc   :  { %837 = vmatmul.mubr.bf16.vlgmr.msra.gmra.mxu1 %v433_v57 }
 0x37c   :  { %v537_v62 = vpop.f32.mrf.mxu1 }
 0x37d   :  { %v538_v63 = vadd.f32 %v714_v61, %v537_v62 }
 0x37e   :  { %v838_v1 = vpop.f32.mrf.mxu1 }
 0x37f   :  { %v543_v2 = vmax.f32 %v538_v63, 0.0 }
 0x380   :  { %v540_v3 = vpop.f32.mrf.mxu1 }
 0x381   :  { %v544_v4 = vpack.c.bf16 %v543_v2, %v543_v2 }
 0x382   :  { %v839_v5 = vpop.f32.mrf.mxu1 }
 0x383   :  { %857 = vmatmul.mubr.bf16.vlgmr.msra.gmra.mxu0 %v544_v4 }
 0x443   :  { %v650_v6 = vpop.f32.mrf.mxu0 }
 0x444   :  { %v651_v7 = vadd.f32 %v723_v0, %v650_v6 }
 0x445   :  { %v858_v8 = vpop.f32.mrf.mxu0 }
 0x446   :  { %656 = vmax.xlane.f32.xlu0 %v651_v7 }
 0x447   :  { %v653_v9 = vpop.f32.mrf.mxu0 }
 0x449   :  { %v859_v10 = vpop.f32.mrf.mxu0 }
 0x4cf   :  { %v657_v11 = vpop.xlane.xlu0 %656 }
 0x4d0   :  { %v658_v12 = vsub.f32 %v651_v7, %v657_v11 }
 0x4d2   :  { %v659_v13 = vmul.f32 1.442695, %v658_v12 }
 0x4d4   :  { %906 = vpow2.f32 %v659_v13 }
 0x4e1   :  { %v907_v14 = vpop.eup %906 }
 0x4e2   :  { %661 = vadd.xlane.f32.xlu0 %v907_v14 }
 0x56b   :  { %v662_v15 = vpop.xlane.xlu0 %661 }
 0x56c   :  { %908 = vrcp.f32 %v662_v15 }
 0x579   :  { %v909_v16 = vpop.eup %908 }
 0x57a   :  { %v664_v17 = vmul.f32 %v909_v16, %v907_v14 }
 0x57c   :  { %v665_v18 = vpack.c.bf16 %v664_v17, %v664_v17 }
 0x57e   :  { %666 = vst [vmem:[#allocation16] sm:$0xf] %v665_v18 }
 0x57f   :  { %1063 = shalt.err (!%p1060_p3)
}
 0x580   :  { %676 = dma.vmem_to_hbm [thread:$0]  %s674_s14, 64, %s1254_s9, [#allocation6]  }
 0x581   :  { %1080 = dma.done.wait [#allocation6], 64  }
 0x582   :  { %1081 = vsyncadd [#allocation6], 4294967232 }
 0x583   :  { %680 = vsyncpa [#allocation5], 1 }
 0x584   :  { %681 = vsyncpa [#allocation8], 1 }
 0x585   :  { %682 = vsyncpa [#allocation11], 1 }
 0x586   :  { %683 = vsyncpa [#allocation14], 1 }
 0x587   :  { %684 = vsyncpa [#allocation6], 1 }

</bundles_post_ra>
